<compile_context>
chip_gen: v7x
topology: tpu7x:2x2x1
jax: 0.10.0
libtpu: 0.0.40
codegen_flags: <defaults>
</compile_context>

<pallas_src>
import jax
import jax.numpy as jnp
from jax import lax
from jax.experimental import pallas as pl
from jax.experimental.pallas import tpu as pltpu


def _discriminator_kernel(v_ref, h1_ref, h2_ref, b_ref, o1_ref, o2_ref):
    # v_ref:  (B, n_h)          VMEM, f32, resident (constant index_map)
    # h1_ref: (B, TILE_N, n_h)  VMEM (streamed, double-buffered)
    # h2_ref: (B, TILE_N, n_h)  VMEM (streamed, double-buffered)
    # b_ref:  (1,)              SMEM, f32 bias scalar
    # o1/o2:  (B, TILE_N)       VMEM, f32, lane-dense stores
    v_b = v_ref[...][:, None, :]                      # (B, 1, n_h) f32
    bias = b_ref[0]

    # score[b, n] = sum_i h[b, n, i] * v[b, i]  — VPU multiply + lane reduce,
    # f32 accumulation regardless of input dtype (bf16-friendly).
    s1 = jnp.sum(h1_ref[...].astype(jnp.float32) * v_b, axis=-1) + bias
    s2 = jnp.sum(h2_ref[...].astype(jnp.float32) * v_b, axis=-1) + bias

    o1_ref[...] = s1.astype(o1_ref.dtype)
    o2_ref[...] = s2.astype(o2_ref.dtype)


def _pick_tile_n(B, N, n_h, itemsize, tile_n=None, budget_bytes=16 << 20):
    """Node-tile size: multiple of 128, sized so 2 inputs x 2 pipeline
    buffers of (B, tile_n, n_h) stay within a v7x-safe VMEM budget."""
    if tile_n is not None:
        if tile_n >= N:
            return N
        return max(128, (tile_n // 128) * 128)
    per_row = 4 * B * n_h * itemsize          # 2 inputs x 2 buffers, per node row
    tile = max(128, min(2048, budget_bytes // max(per_row, 1)))
    tile = (tile // 128) * 128
    return N if N <= tile else tile


def discriminator_forward(s, h_1, h_2, weight, bias, *, tile_n=None):
    """Pallas implementation of Discriminator.forward.

    Args:
      s:      (B, n_h)
      h_1:    (B, N, n_h)
      h_2:    (B, N, n_h)
      weight: (n_h, n_h)   (W[0] of nn.Bilinear(n_h, n_h, 1))
      bias:   (1,) or (1, 1) bias of the bilinear layer
    Returns:
      logits: (B, 2N) float32
    """
    B, N, n_h = h_1.shape
    assert s.shape == (B, n_h)
    assert h_2.shape == (B, N, n_h)
    assert h_1.dtype == h_2.dtype

    # v[b, i] = sum_j W[i, j] * s[b, j] == S @ W^T, computed once for the
    # whole batch (tiny), f32 accumulation. Kept VMEM-resident in the kernel.
    v = lax.dot_general(
        s, weight,
        dimension_numbers=(((1,), (1,)), ((), ())),
        preferred_element_type=jnp.float32,
    )                                                   # (B, n_h) f32
    bias_smem = jnp.asarray(bias, jnp.float32).reshape(-1)[:1]   # (1,) f32

    itemsize = jnp.dtype(h_1.dtype).itemsize
    tn = _pick_tile_n(B, N, n_h, itemsize, tile_n)
    grid = (pl.cdiv(N, tn),)

    flops = 4 * B * N * n_h                              # 2 * (mul + add) per elem
    bytes_accessed = 2 * B * N * n_h * itemsize + B * n_h * 4 + 2 * B * N * 4

    score1, score2 = pl.pallas_call(
        _discriminator_kernel,
        grid_spec=pltpu.PrefetchScalarGridSpec(
            num_scalar_prefetch=0,
            grid=grid,
            in_specs=[
                pl.BlockSpec((B, n_h), lambda j: (0, 0)),            # v (resident)
                pl.BlockSpec((B, tn, n_h), lambda j: (0, j, 0)),     # h_1 tile
                pl.BlockSpec((B, tn, n_h), lambda j: (0, j, 0)),     # h_2 tile
                pl.BlockSpec(memory_space=pltpu.MemorySpace.SMEM),   # bias scalar
            ],
            out_specs=(
                pl.BlockSpec((B, tn), lambda j: (0, j)),
                pl.BlockSpec((B, tn), lambda j: (0, j)),
            ),
        ),
        out_shape=(
            jax.ShapeDtypeStruct((B, N), jnp.float32),
            jax.ShapeDtypeStruct((B, N), jnp.float32),
        ),
        compiler_params=pltpu.CompilerParams(
            dimension_semantics=("parallel",),
            vmem_limit_bytes=32 * 1024 * 1024,
        ),
        cost_estimate=pl.CostEstimate(
            flops=flops, transcendentals=0, bytes_accessed=bytes_accessed),
    )(v, h_1, h_2, bias_smem)

    # Final concat over the tiny (B, 2N) logits; negligible vs. h traffic and
    # keeps the kernel's per-tile stores fully lane-dense.
    return jnp.concatenate([score1, score2], axis=1)


def reference_forward(s, h_1, h_2, weight, bias):
    """Pure-JAX reference matching torch.nn.Bilinear semantics."""
    v = lax.dot_general(
        s, weight,
        dimension_numbers=(((1,), (1,)), ((), ())),
        preferred_element_type=jnp.float32,
    )
    b = jnp.asarray(bias, jnp.float32).reshape(-1)[0]
    s1 = jnp.einsum("bni,bi->bn", h_1.astype(jnp.float32), v) + b
    s2 = jnp.einsum("bni,bi->bn", h_2.astype(jnp.float32), v) + b
    return jnp.concatenate([s1, s2], axis=1)


def _make_inputs(key, B, N, n_h, dtype):
    k_s, k_h1, k_h2, k_w, k_b = jax.random.split(key, 5)
    s = jax.random.normal(k_s, (B, n_h), dtype=jnp.float32).astype(dtype)
    h_1 = jax.random.normal(k_h1, (B, N, n_h), dtype=jnp.float32).astype(dtype)
    h_2 = jax.random.normal(k_h2, (B, N, n_h), dtype=jnp.float32).astype(dtype)
    # nn.Bilinear(n_h, n_h, 1) weight is (1, n_h, n_h); keep the (n_h, n_h)
    # slice. Xavier-normal: std = sqrt(2 / (fan_in + fan_out)).
    fan_in, fan_out = n_h * n_h, n_h
    std = (2.0 / (fan_in + fan_out)) ** 0.5
    weight = (std * jax.random.normal(k_w, (n_h, n_h), jnp.float32)).astype(dtype)
    bias = 0.01 * jax.random.normal(k_b, (1,), jnp.float32)
    return s, h_1, h_2, weight, bias


if __name__ == "__main__":
    key = jax.random.PRNGKey(0)
    k1, k2 = jax.random.split(key)

    # --- Small f32 check (shapes consistent with the module), exact math ---
    B, N, n_h = 2, 8, 32
    s, h_1, h_2, w, b = _make_inputs(k1, B, N, n_h, jnp.float32)
    logits = jax.block_until_ready(discriminator_forward(s, h_1, h_2, w, b))
    ref = reference_forward(s, h_1, h_2, w, b)
    assert logits.shape == (B, 2 * N)
    assert jnp.allclose(logits, ref, atol=1e-5, rtol=1e-5), (
        f"f32 max abs err = {jnp.max(jnp.abs(logits - ref))}")

    # --- bf16 inputs + multi-step node grid (exercises tiling/pipelining) ---
    B2, N2, n_h2 = 2, 1024, 128
    s2, h1b, h2b, w2, b2 = _make_inputs(k2, B2, N2, n_h2, jnp.bfloat16)
    logits_bf16 = jax.block_until_ready(
        discriminator_forward(s2, h1b, h2b, w2, b2, tile_n=256))
    ref_bf16 = reference_forward(s2, h1b, h2b, w2, b2)
    assert logits_bf16.shape == (B2, 2 * N2)
    assert jnp.allclose(logits_bf16, ref_bf16, atol=2e-3, rtol=2e-3), (
        f"bf16 max abs err = {jnp.max(jnp.abs(logits_bf16 - ref_bf16))}")

    print("KERNEL_OK")
</pallas_src>

<mosaic_0001>
module attributes {stable_mosaic.version = 11 : i64} {
  func.func @_discriminator_kernel(%arg0: i32, %arg1: memref<2x32xf32, #tpu.memory_space<vmem>>, %arg2: memref<2x8x32xf32, #tpu.memory_space<vmem>>, %arg3: memref<2x8x32xf32, #tpu.memory_space<vmem>>, %arg4: memref<1xf32, #tpu.memory_space<smem>>, %arg5: memref<2x8xf32, #tpu.memory_space<vmem>>, %arg6: memref<2x8xf32, #tpu.memory_space<vmem>>) attributes {dimension_semantics = [#tpu.dimension_semantics<parallel>], iteration_bounds = array<i64: 1>, scalar_prefetch = 0 : i64, scratch_operands = 0 : i64, tpu.core_type = #tpu.core_type<tc>, window_params = [{pipeline_mode = #tpu.pipeline_mode<synchronous>, transform_indices = @transform_0, window_bounds = array<i64: 2, 32>}, {transform_indices = @transform_1, window_bounds = array<i64: 2, 8, 32>}, {transform_indices = @transform_2, window_bounds = array<i64: 2, 8, 32>}, {transform_indices = @transform_3, window_bounds = array<i64: 1>}, {transform_indices = @transform_4, window_bounds = array<i64: 2, 8>}, {transform_indices = @transform_5, window_bounds = array<i64: 2, 8>}]} {
    %c0 = arith.constant 0 : index
    %c0_0 = arith.constant 0 : index
    %0 = vector.load %arg1[%c0, %c0_0] : memref<2x32xf32, #tpu.memory_space<vmem>>, vector<2x32xf32>
    %1 = vector.shape_cast %0 : vector<2x32xf32> to vector<2x1x32xf32>
    %c0_1 = arith.constant 0 : index
    %2 = memref.load %arg4[%c0_1] : memref<1xf32, #tpu.memory_space<smem>>
    %c0_2 = arith.constant 0 : index
    %c0_3 = arith.constant 0 : index
    %c0_4 = arith.constant 0 : index
    %3 = vector.load %arg2[%c0_2, %c0_3, %c0_4] : memref<2x8x32xf32, #tpu.memory_space<vmem>>, vector<2x8x32xf32>
    %4 = vector.broadcast %1 : vector<2x1x32xf32> to vector<2x8x32xf32>
    %5 = arith.mulf %3, %4 : vector<2x8x32xf32>
    %cst = arith.constant dense<0.000000e+00> : vector<2x8xf32>
    %6 = vector.multi_reduction <add>, %5, %cst [2] : vector<2x8x32xf32> to vector<2x8xf32>
    %7 = vector.broadcast %2 : f32 to vector<2x8xf32>
    %8 = arith.addf %6, %7 : vector<2x8xf32>
    %c0_5 = arith.constant 0 : index
    %c0_6 = arith.constant 0 : index
    %c0_7 = arith.constant 0 : index
    %9 = vector.load %arg3[%c0_5, %c0_6, %c0_7] : memref<2x8x32xf32, #tpu.memory_space<vmem>>, vector<2x8x32xf32>
    %10 = vector.broadcast %1 : vector<2x1x32xf32> to vector<2x8x32xf32>
    %11 = arith.mulf %9, %10 : vector<2x8x32xf32>
    %cst_8 = arith.constant dense<0.000000e+00> : vector<2x8xf32>
    %12 = vector.multi_reduction <add>, %11, %cst_8 [2] : vector<2x8x32xf32> to vector<2x8xf32>
    %13 = vector.broadcast %2 : f32 to vector<2x8xf32>
    %14 = arith.addf %12, %13 : vector<2x8xf32>
    %c0_9 = arith.constant 0 : index
    %c0_10 = arith.constant 0 : index
    %15 = vector.load %arg5[%c0_9, %c0_10] : memref<2x8xf32, #tpu.memory_space<vmem>>, vector<2x8xf32>
    tpu.vector_store %arg5[%c0_9, %c0_10], %8 {strides = array<i32>} : memref<2x8xf32, #tpu.memory_space<vmem>>, vector<2x8xf32>,
    %c0_11 = arith.constant 0 : index
    %c0_12 = arith.constant 0 : index
    %16 = vector.load %arg6[%c0_11, %c0_12] : memref<2x8xf32, #tpu.memory_space<vmem>>, vector<2x8xf32>
    tpu.vector_store %arg6[%c0_11, %c0_12], %14 {strides = array<i32>} : memref<2x8xf32, #tpu.memory_space<vmem>>, vector<2x8xf32>,
    return
  }
  func.func @transform_0(%arg0: i32) -> (i32, i32) {
    %c0_i32 = arith.constant 0 : i32
    %c0_i32_0 = arith.constant 0 : i32
    %c0_i32_1 = arith.constant 0 : i32
    return %c0_i32, %c0_i32_0 : i32, i32
  }
  func.func @transform_1(%arg0: i32) -> (i32, i32, i32) {
    %c0_i32 = arith.constant 0 : i32
    %c0_i32_0 = arith.constant 0 : i32
    %c0_i32_1 = arith.constant 0 : i32
    return %c0_i32, %arg0, %c0_i32_0 : i32, i32, i32
  }
  func.func @transform_2(%arg0: i32) -> (i32, i32, i32) {
    %c0_i32 = arith.constant 0 : i32
    %c0_i32_0 = arith.constant 0 : i32
    %c0_i32_1 = arith.constant 0 : i32
    return %c0_i32, %arg0, %c0_i32_0 : i32, i32, i32
  }
  func.func @transform_3(%arg0: i32) -> i32 {
    %c0_i32 = arith.constant 0 : i32
    %c0_i32_0 = arith.constant 0 : i32
    return %c0_i32 : i32
  }
  func.func @transform_4(%arg0: i32) -> (i32, i32) {
    %c0_i32 = arith.constant 0 : i32
    %c0_i32_0 = arith.constant 0 : i32
    return %c0_i32, %arg0 : i32, i32
  }
  func.func @transform_5(%arg0: i32) -> (i32, i32) {
    %c0_i32 = arith.constant 0 : i32
    %c0_i32_0 = arith.constant 0 : i32
    return %c0_i32, %arg0 : i32, i32
  }
}

</mosaic_0001>

<bundles_post_ra>
// kernel: tpu_custom_call.1
= control target key start
LH: loop header
LB: loop body
LE: loop exit
PB: predicated region body
PF: predicated region fallthrough
CT: control target
= control target key end

     0   :  { %12 = vsyncpa [#allocation4], 0  ;;  %s366_s0 = inlined_call_operand.vmem [shape: f32[2,32], index: 0, kind: input, shape index: {}]   ;;  %s367_s1 = inlined_call_operand.hbm [shape: f32[2,8,32], index: 1, kind: input, shape index: {}]   ;;  %s368_s2 = inlined_call_operand.hbm [shape: f32[2,8,32], index: 2, kind: input, shape index: {}]   ;;  %s369_s3 = inlined_call_operand.<no memory space> [shape: f32[1], index: 3, kind: input, shape index: {}]   ;;  %s370_s4 = inlined_call_operand.hbm [shape: f32[2,8], index: 4, kind: output, shape index: {0}]   ;;  %s371_s5 = inlined_call_operand.hbm [shape: f32[2,8], index: 5, kind: output, shape index: {1}]  }
   0x1   :  { %13 = vsyncpa [#allocation7], 0 }
   0x2   :  { %14 = vsyncpa [#allocation5], 0 }
   0x3   :  { %15 = vsyncpa [#allocation10], 0  ;;  %s275_s18 = smov [#allocation3]   ;;  %s179_s22 = scalar_lea.hbm %s367_s1, 256 }
   0x4   :  { %s23_s19 = sshll.u32 %s275_s18, 4  ;;  %p180_p0 = scmp.ne.s32.totalorder %s367_s1, %s179_s22  ;;  %s24_s19 = int_to_ptr.vmem [resolvable:$true] %s23_s19 }
   0x5   :  { %p183_p1 = scmp.lt.u32.totalorder %s179_s22, %s367_s1 }
   0x7   :  { %p185_p2 = pnand %p183_p1, %p180_p0 }
   0x9   :  { %188 = shalt.err (!%p185_p2)
}
   0xa   :  { %s189_s27 = scalar_lea.vmem %s24_s19, 256  ;;  %p194_p4 = scmp.lt.s32.totalorder %s24_s19, %s24_s19 }
   0xb   :  { %p190_p3 = scmp.ne.s32.totalorder %s24_s19, %s189_s27  ;;  %p195_p5 = scmp.lt.s32.totalorder %s189_s27, %s189_s27 }
   0xd   :  { %p196_p6 = por %p195_p5, %p194_p4 }
   0xf   :  { %p197_p7 = pnand %p196_p6, %p190_p3 }
  0x11   :  { %200 = shalt.err (!%p197_p7)
}
  0x12   :  { %s276_s28 = smov 128   ;;  %s277_s29 = smov 8  }
  0x13   :  { %29 = dma.hbm_to_vmem [thread:$0]  %s367_s1, 256, %s24_s19, [#allocation4], %s276_s28, %s276_s28, %s277_s29  }
  0x14   :  { %s278_s7 = smov [#allocation6]   ;;  %s201_s11 = scalar_lea.hbm %s368_s2, 256 }
  0x15   :  { %s35_s8 = sshll.u32 %s278_s7, 4  ;;  %p202_p8 = scmp.ne.s32.totalorder %s368_s2, %s201_s11  ;;  %s36_s8 = int_to_ptr.vmem [resolvable:$true] %s35_s8 }
  0x16   :  { %p205_p9 = scmp.lt.u32.totalorder %s201_s11, %s368_s2 }
  0x18   :  { %p207_p10 = pnand %p205_p9, %p202_p8 }
  0x1a   :  { %210 = shalt.err (!%p207_p10)
}
  0x1b   :  { %s211_s16 = scalar_lea.vmem %s36_s8, 256  ;;  %p216_p12 = scmp.lt.s32.totalorder %s36_s8, %s36_s8 }
  0x1c   :  { %p212_p11 = scmp.ne.s32.totalorder %s36_s8, %s211_s16  ;;  %p217_p13 = scmp.lt.s32.totalorder %s211_s16, %s211_s16 }
  0x1e   :  { %p218_p0 = por %p217_p13, %p216_p12 }
  0x20   :  { %p219_p1 = pnand %p218_p0, %p212_p11 }
  0x22   :  { %222 = shalt.err (!%p219_p1)
}
  0x23   :  { %41 = dma.hbm_to_vmem [thread:$0]  %s368_s2, 256, %s36_s8, [#allocation7], %s276_s28, %s276_s28, %s277_s29  }
  0x24   :  { %267 = dma.done.wait [#allocation4], 256  }
  0x25   :  { %268 = vsyncadd [#allocation4], 4294967040 }
  0x26   :  { %269 = dma.done.wait [#allocation7], 256  }
  0x27   :  { %270 = vsyncadd [#allocation7], 4294967040  ;;  %v63_v0 = vlaneseq  ;;  %v279_v1 = vmov 1966171168   ;;  %v99_v12 = vld [vmem:[#allocation6] sm:$0xff]  ;;  %v75_v13 = vld [vmem:[#allocation3] sm:$0xff]  ;;  %v96_v27 = vstv %s369_s3 }
  0x28   :  { %v61_v2 = vunpack.c.l.s4 %v279_v1  ;;  %v171_v9 = vld.sshfl [vmem:[%s366_s0] sm:$0x11 pattern:$0x75316420]  ;;  %vm89_vm0 = vcmask 261120   ;;  %v100_v16 = vld [vmem:[#allocation6 + $0x8] sm:$0xff] }
  0x29   :  { %v64_v3 = vshrl.u32 %v63_v0, 7  ;;  %v114_v4 = vand.u32 127, %v63_v0  ;;  %v59_v11 = vcombine.high %v171_v9, %v171_v9  ;;  %v76_v17 = vld [vmem:[#allocation3 + $0x8] sm:$0xff]  ;;  %s280_s20 = smov [#allocation8]   ;;  %vm123_vm1 = vcmask 1041409   ;;  %s281_s22 = smov [#allocation9]  }
  0x2a   :  { %v62_v5 = vunpack.c.0.s8 %v61_v2  ;;  %s147_s21 = sshll.u32 %s280_s20, 4  ;;  %vm126_vm2 = vcmask 58368   ;;  %s157_s23 = sshll.u32 %s281_s22, 4  ;;  %s148_s21 = int_to_ptr.vmem [resolvable:$true] %s147_s21  ;;  %s158_s23 = int_to_ptr.vmem [resolvable:$true] %s157_s23 }
  0x2b   :  { %v117_v6 = vsub.s32 %v114_v4, %v64_v3  ;;  %v79_v8 = vsub.s32 0, %v64_v3  ;;  %s223_s3 = scalar_lea.vmem %s148_s21, 32  ;;  %p228_p3 = scmp.lt.s32.totalorder %s148_s21, %s148_s21 }
  0x2c   :  { %v65_v7 = vsub.s32 %v62_v5, %v64_v3  ;;  %p224_p2 = scmp.ne.s32.totalorder %s148_s21, %s223_s3  ;;  %p229_p4 = scmp.lt.s32.totalorder %s223_s3, %s223_s3 }
  0x2e   :  { %v66_v10 = vrot.slane %v171_v9, %v65_v7  ;;  %v73_v15 = vrot.slane %v59_v11, %v65_v7  ;;  %p230_p5 = por %p229_p4, %p228_p3 }
  0x30   :  { %v80_v14 = vrot.slane %v66_v10, %v79_v8  ;;  %v84_v20 = vrot.slane %v73_v15, %v79_v8  ;;  %p231_p6 = pnand %p230_p5, %p224_p2 }
  0x32   :  { %v101_v18 = vmul.f32 %v99_v12, %v80_v14  ;;  %v87_v19 = vmul.f32 %v80_v14, %v75_v13  ;;  %v102_v23 = vmul.f32 %v100_v16, %v84_v20  ;;  %v88_v24 = vmul.f32 %v84_v20, %v76_v17 }
  0x34   :  { %v103_v21 = vsel %vm89_vm0, %v101_v18, 0.0  ;;  %v90_v22 = vsel %vm89_vm0, %v87_v19, 0.0  ;;  %v106_v25 = vsel %vm89_vm0, %v102_v23, 0.0  ;;  %v93_v26 = vsel %vm89_vm0, %v88_v24, 0.0 }
  0x35   :  { %104 = vadd.xlane.f32.xlu1 %v103_v21  ;;  %91 = vadd.xlane.f32.xlu0 %v90_v22 }
  0x39   :  { %107 = vadd.xlane.f32.xlu1 %v106_v25  ;;  %94 = vadd.xlane.f32.xlu0 %v93_v26 }
  0xc2   :  { %v105_v28 = vpop.xlane.xlu1 %104  ;;  %v92_v29 = vpop.xlane.xlu0 %91 }
  0xc3   :  { %v109_v30 = vadd.f32 %v105_v28, %v96_v27  ;;  %v97_v31 = vadd.f32 %v96_v27, %v92_v29 }
  0xc5   :  { %v133_v36 = vrot.slane %v109_v30, %v117_v6  ;;  %v118_v37 = vrot.slane %v97_v31, %v117_v6 }
  0xc6   :  { %v108_v32 = vpop.xlane.xlu1 %107  ;;  %v95_v33 = vpop.xlane.xlu0 %94 }
  0xc7   :  { %v110_v34 = vadd.f32 %v108_v32, %v96_v27  ;;  %v98_v35 = vadd.f32 %v96_v27, %v95_v33 }
  0xc9   :  { %v137_v38 = vrot.slane %v110_v34, %v117_v6  ;;  %v122_v39 = vrot.slane %v98_v35, %v117_v6 }
  0xcb   :  { %v124_v40 = vsel %vm123_vm1, %v122_v39, %v118_v37  ;;  %v138_v41 = vsel %vm123_vm1, %v137_v38, %v133_v36 }
  0xcc   :  { %127 = vst.msk [vmem:[#allocation8] sm:$0x3] %vm126_vm2, %v124_v40  ;;  %140 = vst.msk [vmem:[#allocation9] sm:$0x3] %vm126_vm2, %v138_v41 }
  0xcd   :  { %234 = shalt.err (!%p231_p6)
}
  0xce   :  { %s235_s26 = scalar_lea.hbm %s370_s4, 32 }
  0xcf   :  { %p236_p7 = scmp.ne.s32.totalorder %s370_s4, %s235_s26  ;;  %p239_p8 = scmp.lt.u32.totalorder %s235_s26, %s370_s4 }
  0xd1   :  { %p241_p9 = pnand %p239_p8, %p236_p7 }
  0xd3   :  { %244 = shalt.err (!%p241_p9)
}
  0xd4   :  { %150 = dma.vmem_to_hbm [thread:$0]  %s148_s21, 32, %s370_s4, [#allocation5]  }
  0xd5   :  { %s245_s8 = scalar_lea.vmem %s158_s23, 32  ;;  %p250_p11 = scmp.lt.s32.totalorder %s158_s23, %s158_s23 }
  0xd6   :  { %p246_p10 = scmp.ne.s32.totalorder %s158_s23, %s245_s8  ;;  %p251_p12 = scmp.lt.s32.totalorder %s245_s8, %s245_s8 }
  0xd8   :  { %p252_p13 = por %p251_p12, %p250_p11 }
  0xda   :  { %p253_p0 = pnand %p252_p13, %p246_p10 }
  0xdc   :  { %256 = shalt.err (!%p253_p0)
}
  0xdd   :  { %s257_s11 = scalar_lea.hbm %s371_s5, 32 }
  0xde   :  { %p258_p1 = scmp.ne.s32.totalorder %s371_s5, %s257_s11  ;;  %p261_p2 = scmp.lt.u32.totalorder %s257_s11, %s371_s5 }
  0xe0   :  { %p263_p3 = pnand %p261_p2, %p258_p1 }
  0xe2   :  { %266 = shalt.err (!%p263_p3)
}
  0xe3   :  { %160 = dma.vmem_to_hbm [thread:$0]  %s158_s23, 32, %s371_s5, [#allocation10]  }
  0xe4   :  { %271 = dma.done.wait [#allocation5], 32  }
  0xe5   :  { %272 = vsyncadd [#allocation5], 4294967264 }
  0xe6   :  { %273 = dma.done.wait [#allocation10], 32  }
  0xe7   :  { %274 = vsyncadd [#allocation10], 4294967264 }
  0xe8   :  { %167 = vsyncpa [#allocation4], 1 }
  0xe9   :  { %168 = vsyncpa [#allocation7], 1 }
  0xea   :  { %169 = vsyncpa [#allocation5], 1 }
  0xeb   :  { %170 = vsyncpa [#allocation10], 1 }

</bundles_post_ra>
